<compile_context>
chip_gen: v7x
topology: tpu7x:2x2x1
jax: 0.10.0
libtpu: 0.0.40
codegen_flags: <defaults>
</compile_context>

<pallas_src>
import functools
import math

import jax
import jax.numpy as jnp
from jax import lax
from jax.experimental import pallas as pl
from jax.experimental.pallas import tpu as pltpu


_CHUNK_ROWS = 32                 # 32 x 128 f32 carry = 4 vregs per chunk
_TARGET_BLOCK_BYTES = 4 << 20    # in+out per grid step (~8 MiB double-buffered):
                                 # fits default scoped VMEM on v5e/v6e/v7x.


def _pick_rows(n_rows, bytes_per_row):
    """Rows per block: large DMAs, small per-chunk carry, and (when the data is big
    enough) >= ~4 grid steps so the 'parallel' axis can split across TensorCores."""
    if n_rows <= _CHUNK_ROWS:
        return n_rows, n_rows                       # single block == full dim (legal)
    chunk = _CHUNK_ROWS
    n_full = (n_rows // chunk) * chunk
    target = max(chunk, (_TARGET_BLOCK_BYTES // max(1, bytes_per_row)) // chunk * chunk)
    rows_for_4 = max(chunk, ((n_rows + 4 * chunk - 1) // (4 * chunk)) * chunk)
    rows = min(n_full, target, rows_for_4)
    return rows, chunk


# ----------------------------------------------------------------------------------
# Fused kernel: time-last (module) layout, recurrence across lanes.
# ----------------------------------------------------------------------------------
def _bptt_fused_kernel(x_ref, out_ref, *, tau, vth, v_r, T, chunk_rows):
    """x_ref/out_ref: (R, 128) tiles of the flat activation viewed as (total//128, 128).

    Memory is row-major with time fastest, so lane l of a row holds timestep (l % T)
    of feature (l // T).  The recurrence therefore moves a value one lane to the
    right each step (within its T-lane group) via pltpu.roll.
    """
    R, L = x_ref.shape            # L == 128
    n_chunks = R // chunk_rows

    lane = lax.broadcasted_iota(jnp.int32, (chunk_rows, L), 1)
    phase = lane % T
    # Direction-proof "previous lane": pick whichever rotation actually brings lane
    # l-1 into lane l (checked against a rolled iota; the check is uniform over all
    # lanes that are ever active for t >= 1, i.e. l % T >= 1 so l >= 1).
    lane_rolled = pltpu.roll(lane, shift=1, axis=1)
    roll_is_prev = lane_rolled == (lane - 1)
    v_r_b = jnp.full((chunk_rows, L), v_r, jnp.float32)

    def chunk_body(c, carry):
        r0 = pl.multiple_of(c * chunk_rows, chunk_rows)
        x = x_ref[pl.ds(r0, chunk_rows), :].astype(jnp.float32)

        # t = 0:  u = 0 * tau + x
        active = phase == 0
        u = jnp.where(active, x, 0.0)
        s = active & (u >= vth)
        u = jnp.where(s, v_r_b, u)
        spikes = s

        for t in range(1, T):                       # short static loop (T <= 128)
            prev_a = pltpu.roll(u, shift=1, axis=1)
            prev_b = pltpu.roll(u, shift=L - 1, axis=1)
            prev = jnp.where(roll_is_prev, prev_a, prev_b)
            cand = prev * tau + x
            active = phase == t
            s = active & (cand >= vth)
            u = jnp.where(active, jnp.where(s, v_r_b, cand), u)
            spikes = spikes | s

        out_ref[pl.ds(r0, chunk_rows), :] = spikes.astype(out_ref.dtype)
        return carry

    lax.fori_loop(0, n_chunks, chunk_body, 0)


# ----------------------------------------------------------------------------------
# Time-major kernel: zero-copy fast path for producers emitting (T, N) activations.
# ----------------------------------------------------------------------------------
def _bptt_time_major_kernel(x_ref, out_ref, *, tau, vth, v_r, chunk_rows):
    """x_ref/out_ref: (T, R, 128) tiles; sequential recurrence over axis 0."""
    T, R, L = x_ref.shape
    n_chunks = R // chunk_rows
    v_r_b = jnp.full((chunk_rows, L), v_r, jnp.float32)

    def chunk_body(c, carry):
        r0 = pl.multiple_of(c * chunk_rows, chunk_rows)

        def step(t, u):
            u = u * tau + x_ref[t, pl.ds(r0, chunk_rows), :].astype(jnp.float32)
            s = u >= vth
            out_ref[t, pl.ds(r0, chunk_rows), :] = s.astype(out_ref.dtype)
            return jnp.where(s, v_r_b, u)

        lax.fori_loop(0, T, step, jnp.zeros((chunk_rows, L), jnp.float32),
                      unroll=True)
        return carry

    lax.fori_loop(0, n_chunks, chunk_body, 0)


# ----------------------------------------------------------------------------------
# Wrappers
# ----------------------------------------------------------------------------------
def bptt_neuron_time_major(x_tf, tau=0.125, vth=1.0, v_r=0.0, out_dtype=None):
    """x_tf: (T, N) time-major activations. Returns spikes (T, N)."""
    out_dtype = x_tf.dtype if out_dtype is None else jnp.dtype(out_dtype)
    T, N = x_tf.shape
    pad = (-N) % 128
    if pad:                                # copies only when N is not lane-aligned
        x_tf = jnp.pad(x_tf, ((0, 0), (0, pad)))
    F = (N + pad) // 128
    x3 = x_tf.reshape(T, F, 128)           # free, row-major reshape

    bytes_per_row = T * 128 * (x_tf.dtype.itemsize + jnp.dtype(out_dtype).itemsize)
    blk_rows, chunk = _pick_rows(F, bytes_per_row)
    grid = (pl.cdiv(F, blk_rows),)

    out3 = pl.pallas_call(
        functools.partial(_bptt_time_major_kernel, tau=tau, vth=vth, v_r=v_r,
                          chunk_rows=chunk),
        out_shape=jax.ShapeDtypeStruct((T, F, 128), out_dtype),
        grid_spec=pl.GridSpec(
            grid=grid,
            in_specs=[pl.BlockSpec((T, blk_rows, 128), lambda i: (0, i, 0))],
            out_specs=pl.BlockSpec((T, blk_rows, 128), lambda i: (0, i, 0)),
        ),
        compiler_params=pltpu.CompilerParams(dimension_semantics=("parallel",)),
        cost_estimate=pl.CostEstimate(
            flops=5 * T * N, transcendentals=0,
            bytes_accessed=T * N * (x_tf.dtype.itemsize + jnp.dtype(out_dtype).itemsize)),
    )(x3)

    out = out3.reshape(T, F * 128)
    return out[:, :N] if pad else out


def bptt_neuron(x, tau=0.125, vth=1.0, v_r=0.0, out_dtype=None):
    """x: (..., T) with time last (PyTorch module layout, e.g. (B, C, H, W, T))."""
    out_dtype = x.dtype if out_dtype is None else jnp.dtype(out_dtype)
    lead, T = x.shape[:-1], x.shape[-1]
    n_feat = math.prod(lead) if lead else 1
    total = n_feat * T

    if T > 0 and 128 % T == 0 and total % 128 == 0:
        # Fused path: zero layout changes around the kernel (reshape is free).
        rows = total // 128
        xr = x.reshape(rows, 128)
        bytes_per_row = 128 * (x.dtype.itemsize + jnp.dtype(out_dtype).itemsize)
        blk_rows, chunk = _pick_rows(rows, bytes_per_row)
        grid = (pl.cdiv(rows, blk_rows),)

        out = pl.pallas_call(
            functools.partial(_bptt_fused_kernel, tau=tau, vth=vth, v_r=v_r,
                              T=T, chunk_rows=chunk),
            out_shape=jax.ShapeDtypeStruct((rows, 128), out_dtype),
            grid_spec=pl.GridSpec(
                grid=grid,
                in_specs=[pl.BlockSpec((blk_rows, 128), lambda i: (i, 0))],
                out_specs=pl.BlockSpec((blk_rows, 128), lambda i: (i, 0)),
            ),
            compiler_params=pltpu.CompilerParams(dimension_semantics=("parallel",)),
            cost_estimate=pl.CostEstimate(
                flops=6 * total, transcendentals=0,
                bytes_accessed=total * (x.dtype.itemsize + jnp.dtype(out_dtype).itemsize)),
        )(xr)
        return out.reshape(x.shape)

    # Fallback for T that does not divide 128 / lane-ragged totals: one transpose
    # each way around the time-major kernel.
    # TODO(synk): strided-lane de-interleave variant for T values not dividing 128.
    x_tf = x.reshape(n_feat, T).T
    out_tf = bptt_neuron_time_major(x_tf, tau=tau, vth=vth, v_r=v_r,
                                    out_dtype=out_dtype)
    return out_tf.T.reshape(x.shape)


# ----------------------------------------------------------------------------------
# Pure-JAX reference (mirrors the PyTorch loop; surrogate forward = Heaviside)
# ----------------------------------------------------------------------------------
def _reference(x, tau=0.125, vth=1.0, v_r=0.0):
    T = x.shape[-1]
    u = jnp.zeros_like(x[..., 0])
    outs = []
    for t in range(T):
        u = u * tau + x[..., t]
        s = (u >= vth).astype(x.dtype)
        outs.append(s)
        u = (1.0 - s) * u + s * v_r
    return jnp.stack(outs, -1)


if __name__ == "__main__":
    key = jax.random.PRNGKey(0)
    # B=2, C=4, H=W=16, T=8  ->  N = 2*4*16*16 = 2048 features, time last.
    B, C, H, W, T = 2, 4, 16, 16, 8
    x = jax.random.normal(key, (B, C, H, W, T), dtype=jnp.float32) * 2.0

    out = bptt_neuron(x, tau=0.125, vth=1.0, v_r=0.0)
    out = jax.block_until_ready(out)
    ref = _reference(x, tau=0.125, vth=1.0, v_r=0.0)
    assert out.shape == x.shape
    assert jnp.allclose(out, ref), "fused time-last kernel mismatch vs reference"

    # Also exercise the zero-transpose time-major fast path.
    x_tm = jnp.moveaxis(x, -1, 0).reshape(T, -1)
    out_tm = jax.block_until_ready(
        bptt_neuron_time_major(x_tm, tau=0.125, vth=1.0, v_r=0.0))
    ref_tm = jnp.moveaxis(ref, -1, 0).reshape(T, -1)
    assert jnp.allclose(out_tm, ref_tm), "time-major kernel mismatch vs reference"

    print("KERNEL_OK")
</pallas_src>

<mosaic_0001>
module attributes {stable_mosaic.version = 11 : i64} {
  func.func @_bptt_fused_kernel(%arg0: i32, %arg1: memref<32x128xf32, #tpu.memory_space<vmem>>, %arg2: memref<32x128xf32, #tpu.memory_space<vmem>>) attributes {dimension_semantics = [#tpu.dimension_semantics<parallel>], iteration_bounds = array<i64: 4>, scalar_prefetch = 0 : i64, scratch_operands = 0 : i64, tpu.core_type = #tpu.core_type<tc>, window_params = [{transform_indices = @transform_0, window_bounds = array<i64: 32, 128>}, {transform_indices = @transform_1, window_bounds = array<i64: 32, 128>}]} {
    %0 = tpu.iota {dimensions = array<i32: 1>} : vector<32x128xi32>
    %c8_i32 = arith.constant 8 : i32
    %c0_i32 = arith.constant 0 : i32
    %1 = arith.cmpi eq, %c8_i32, %c0_i32 : i32
    %c1_i32 = arith.constant 1 : i32
    %2 = arith.select %1, %c1_i32, %c8_i32 : i32
    %3 = vector.broadcast %2 : i32 to vector<32x128xi32>
    %4 = arith.remsi %0, %3 : vector<32x128xi32>
    %c0_i32_0 = arith.constant 0 : i32
    %5 = vector.broadcast %c0_i32_0 : i32 to vector<32x128xi32>
    %6 = arith.cmpi ne, %4, %5 : vector<32x128xi32>
    %c0_i32_1 = arith.constant 0 : i32
    %7 = vector.broadcast %c0_i32_1 : i32 to vector<32x128xi32>
    %8 = arith.cmpi slt, %4, %7 : vector<32x128xi32>
    %c0_i32_2 = arith.constant 0 : i32
    %9 = arith.cmpi slt, %2, %c0_i32_2 : i32
    %10 = vector.broadcast %9 : i1 to vector<32x128xi1>
    %11 = vector.broadcast %10 : vector<32x128xi1> to vector<32x128xi1>
    %12 = arith.xori %8, %11 : vector<32x128xi1>
    %13 = arith.andi %12, %6 : vector<32x128xi1>
    %14 = vector.broadcast %2 : i32 to vector<32x128xi32>
    %15 = arith.addi %4, %14 : vector<32x128xi32>
    %16 = arith.select %13, %15, %4 : vector<32x128xi1>, vector<32x128xi32>
    %c1_i32_3 = arith.constant 1 : i32
    %17 = tpu.dynamic_rotate %0 by %c1_i32_3 dim 1 : vector<32x128xi32>, i32 -> vector<32x128xi32>
    %c1_i32_4 = arith.constant 1 : i32
    %18 = vector.broadcast %c1_i32_4 : i32 to vector<32x128xi32>
    %19 = arith.subi %0, %18 : vector<32x128xi32>
    %20 = arith.cmpi eq, %17, %19 : vector<32x128xi32>
    %cst = arith.constant 0.000000e+00 : f32
    %21 = vector.broadcast %cst : f32 to vector<32x128xf32>
    %c0_i32_5 = arith.constant 0 : i32
    %c32_i32 = arith.constant 32 : i32
    %22 = arith.muli %c0_i32_5, %c32_i32 : i32
    %23 = tpu.assume_multiple %22, 32 : i32
    %24 = arith.index_cast %23 : i32 to index
    %c0 = arith.constant 0 : index
    %25 = vector.load %arg1[%24, %c0] : memref<32x128xf32, #tpu.memory_space<vmem>>, vector<32x128xf32>
    %c0_i32_6 = arith.constant 0 : i32
    %26 = vector.broadcast %c0_i32_6 : i32 to vector<32x128xi32>
    %27 = arith.cmpi eq, %16, %26 : vector<32x128xi32>
    %cst_7 = arith.constant 0.000000e+00 : f32
    %28 = vector.broadcast %cst_7 : f32 to vector<32x128xf32>
    %29 = arith.select %27, %25, %28 : vector<32x128xi1>, vector<32x128xf32>
    %cst_8 = arith.constant 1.000000e+00 : f32
    %30 = vector.broadcast %cst_8 : f32 to vector<32x128xf32>
    %31 = arith.cmpf oge, %29, %30 : vector<32x128xf32>
    %32 = arith.andi %27, %31 : vector<32x128xi1>
    %33 = arith.select %32, %21, %29 : vector<32x128xi1>, vector<32x128xf32>
    %c1_i32_9 = arith.constant 1 : i32
    %34 = tpu.dynamic_rotate %33 by %c1_i32_9 dim 1 : vector<32x128xf32>, i32 -> vector<32x128xf32>
    %c127_i32 = arith.constant 127 : i32
    %35 = tpu.dynamic_rotate %33 by %c127_i32 dim 1 : vector<32x128xf32>, i32 -> vector<32x128xf32>
    %36 = arith.select %20, %34, %35 : vector<32x128xi1>, vector<32x128xf32>
    %cst_10 = arith.constant 1.250000e-01 : f32
    %37 = vector.broadcast %cst_10 : f32 to vector<32x128xf32>
    %38 = arith.mulf %36, %37 : vector<32x128xf32>
    %39 = arith.addf %38, %25 : vector<32x128xf32>
    %c1_i32_11 = arith.constant 1 : i32
    %40 = vector.broadcast %c1_i32_11 : i32 to vector<32x128xi32>
    %41 = arith.cmpi eq, %16, %40 : vector<32x128xi32>
    %cst_12 = arith.constant 1.000000e+00 : f32
    %42 = vector.broadcast %cst_12 : f32 to vector<32x128xf32>
    %43 = arith.cmpf oge, %39, %42 : vector<32x128xf32>
    %44 = arith.andi %41, %43 : vector<32x128xi1>
    %45 = arith.select %44, %21, %39 : vector<32x128xi1>, vector<32x128xf32>
    %46 = arith.select %41, %45, %33 : vector<32x128xi1>, vector<32x128xf32>
    %47 = arith.ori %32, %44 : vector<32x128xi1>
    %c1_i32_13 = arith.constant 1 : i32
    %48 = tpu.dynamic_rotate %46 by %c1_i32_13 dim 1 : vector<32x128xf32>, i32 -> vector<32x128xf32>
    %c127_i32_14 = arith.constant 127 : i32
    %49 = tpu.dynamic_rotate %46 by %c127_i32_14 dim 1 : vector<32x128xf32>, i32 -> vector<32x128xf32>
    %50 = arith.select %20, %48, %49 : vector<32x128xi1>, vector<32x128xf32>
    %cst_15 = arith.constant 1.250000e-01 : f32
    %51 = vector.broadcast %cst_15 : f32 to vector<32x128xf32>
    %52 = arith.mulf %50, %51 : vector<32x128xf32>
    %53 = arith.addf %52, %25 : vector<32x128xf32>
    %c2_i32 = arith.constant 2 : i32
    %54 = vector.broadcast %c2_i32 : i32 to vector<32x128xi32>
    %55 = arith.cmpi eq, %16, %54 : vector<32x128xi32>
    %cst_16 = arith.constant 1.000000e+00 : f32
    %56 = vector.broadcast %cst_16 : f32 to vector<32x128xf32>
    %57 = arith.cmpf oge, %53, %56 : vector<32x128xf32>
    %58 = arith.andi %55, %57 : vector<32x128xi1>
    %59 = arith.select %58, %21, %53 : vector<32x128xi1>, vector<32x128xf32>
    %60 = arith.select %55, %59, %46 : vector<32x128xi1>, vector<32x128xf32>
    %61 = arith.ori %47, %58 : vector<32x128xi1>
    %c1_i32_17 = arith.constant 1 : i32
    %62 = tpu.dynamic_rotate %60 by %c1_i32_17 dim 1 : vector<32x128xf32>, i32 -> vector<32x128xf32>
    %c127_i32_18 = arith.constant 127 : i32
    %63 = tpu.dynamic_rotate %60 by %c127_i32_18 dim 1 : vector<32x128xf32>, i32 -> vector<32x128xf32>
    %64 = arith.select %20, %62, %63 : vector<32x128xi1>, vector<32x128xf32>
    %cst_19 = arith.constant 1.250000e-01 : f32
    %65 = vector.broadcast %cst_19 : f32 to vector<32x128xf32>
    %66 = arith.mulf %64, %65 : vector<32x128xf32>
    %67 = arith.addf %66, %25 : vector<32x128xf32>
    %c3_i32 = arith.constant 3 : i32
    %68 = vector.broadcast %c3_i32 : i32 to vector<32x128xi32>
    %69 = arith.cmpi eq, %16, %68 : vector<32x128xi32>
    %cst_20 = arith.constant 1.000000e+00 : f32
    %70 = vector.broadcast %cst_20 : f32 to vector<32x128xf32>
    %71 = arith.cmpf oge, %67, %70 : vector<32x128xf32>
    %72 = arith.andi %69, %71 : vector<32x128xi1>
    %73 = arith.select %72, %21, %67 : vector<32x128xi1>, vector<32x128xf32>
    %74 = arith.select %69, %73, %60 : vector<32x128xi1>, vector<32x128xf32>
    %75 = arith.ori %61, %72 : vector<32x128xi1>
    %c1_i32_21 = arith.constant 1 : i32
    %76 = tpu.dynamic_rotate %74 by %c1_i32_21 dim 1 : vector<32x128xf32>, i32 -> vector<32x128xf32>
    %c127_i32_22 = arith.constant 127 : i32
    %77 = tpu.dynamic_rotate %74 by %c127_i32_22 dim 1 : vector<32x128xf32>, i32 -> vector<32x128xf32>
    %78 = arith.select %20, %76, %77 : vector<32x128xi1>, vector<32x128xf32>
    %cst_23 = arith.constant 1.250000e-01 : f32
    %79 = vector.broadcast %cst_23 : f32 to vector<32x128xf32>
    %80 = arith.mulf %78, %79 : vector<32x128xf32>
    %81 = arith.addf %80, %25 : vector<32x128xf32>
    %c4_i32 = arith.constant 4 : i32
    %82 = vector.broadcast %c4_i32 : i32 to vector<32x128xi32>
    %83 = arith.cmpi eq, %16, %82 : vector<32x128xi32>
    %cst_24 = arith.constant 1.000000e+00 : f32
    %84 = vector.broadcast %cst_24 : f32 to vector<32x128xf32>
    %85 = arith.cmpf oge, %81, %84 : vector<32x128xf32>
    %86 = arith.andi %83, %85 : vector<32x128xi1>
    %87 = arith.select %86, %21, %81 : vector<32x128xi1>, vector<32x128xf32>
    %88 = arith.select %83, %87, %74 : vector<32x128xi1>, vector<32x128xf32>
    %89 = arith.ori %75, %86 : vector<32x128xi1>
    %c1_i32_25 = arith.constant 1 : i32
    %90 = tpu.dynamic_rotate %88 by %c1_i32_25 dim 1 : vector<32x128xf32>, i32 -> vector<32x128xf32>
    %c127_i32_26 = arith.constant 127 : i32
    %91 = tpu.dynamic_rotate %88 by %c127_i32_26 dim 1 : vector<32x128xf32>, i32 -> vector<32x128xf32>
    %92 = arith.select %20, %90, %91 : vector<32x128xi1>, vector<32x128xf32>
    %cst_27 = arith.constant 1.250000e-01 : f32
    %93 = vector.broadcast %cst_27 : f32 to vector<32x128xf32>
    %94 = arith.mulf %92, %93 : vector<32x128xf32>
    %95 = arith.addf %94, %25 : vector<32x128xf32>
    %c5_i32 = arith.constant 5 : i32
    %96 = vector.broadcast %c5_i32 : i32 to vector<32x128xi32>
    %97 = arith.cmpi eq, %16, %96 : vector<32x128xi32>
    %cst_28 = arith.constant 1.000000e+00 : f32
    %98 = vector.broadcast %cst_28 : f32 to vector<32x128xf32>
    %99 = arith.cmpf oge, %95, %98 : vector<32x128xf32>
    %100 = arith.andi %97, %99 : vector<32x128xi1>
    %101 = arith.select %100, %21, %95 : vector<32x128xi1>, vector<32x128xf32>
    %102 = arith.select %97, %101, %88 : vector<32x128xi1>, vector<32x128xf32>
    %103 = arith.ori %89, %100 : vector<32x128xi1>
    %c1_i32_29 = arith.constant 1 : i32
    %104 = tpu.dynamic_rotate %102 by %c1_i32_29 dim 1 : vector<32x128xf32>, i32 -> vector<32x128xf32>
    %c127_i32_30 = arith.constant 127 : i32
    %105 = tpu.dynamic_rotate %102 by %c127_i32_30 dim 1 : vector<32x128xf32>, i32 -> vector<32x128xf32>
    %106 = arith.select %20, %104, %105 : vector<32x128xi1>, vector<32x128xf32>
    %cst_31 = arith.constant 1.250000e-01 : f32
    %107 = vector.broadcast %cst_31 : f32 to vector<32x128xf32>
    %108 = arith.mulf %106, %107 : vector<32x128xf32>
    %109 = arith.addf %108, %25 : vector<32x128xf32>
    %c6_i32 = arith.constant 6 : i32
    %110 = vector.broadcast %c6_i32 : i32 to vector<32x128xi32>
    %111 = arith.cmpi eq, %16, %110 : vector<32x128xi32>
    %cst_32 = arith.constant 1.000000e+00 : f32
    %112 = vector.broadcast %cst_32 : f32 to vector<32x128xf32>
    %113 = arith.cmpf oge, %109, %112 : vector<32x128xf32>
    %114 = arith.andi %111, %113 : vector<32x128xi1>
    %115 = arith.select %114, %21, %109 : vector<32x128xi1>, vector<32x128xf32>
    %116 = arith.select %111, %115, %102 : vector<32x128xi1>, vector<32x128xf32>
    %117 = arith.ori %103, %114 : vector<32x128xi1>
    %c1_i32_33 = arith.constant 1 : i32
    %118 = tpu.dynamic_rotate %116 by %c1_i32_33 dim 1 : vector<32x128xf32>, i32 -> vector<32x128xf32>
    %c127_i32_34 = arith.constant 127 : i32
    %119 = tpu.dynamic_rotate %116 by %c127_i32_34 dim 1 : vector<32x128xf32>, i32 -> vector<32x128xf32>
    %120 = arith.select %20, %118, %119 : vector<32x128xi1>, vector<32x128xf32>
    %cst_35 = arith.constant 1.250000e-01 : f32
    %121 = vector.broadcast %cst_35 : f32 to vector<32x128xf32>
    %122 = arith.mulf %120, %121 : vector<32x128xf32>
    %123 = arith.addf %122, %25 : vector<32x128xf32>
    %c7_i32 = arith.constant 7 : i32
    %124 = vector.broadcast %c7_i32 : i32 to vector<32x128xi32>
    %125 = arith.cmpi eq, %16, %124 : vector<32x128xi32>
    %cst_36 = arith.constant 1.000000e+00 : f32
    %126 = vector.broadcast %cst_36 : f32 to vector<32x128xf32>
    %127 = arith.cmpf oge, %123, %126 : vector<32x128xf32>
    %128 = arith.andi %125, %127 : vector<32x128xi1>
    %129 = arith.ori %117, %128 : vector<32x128xi1>
    %130 = arith.extui %129 : vector<32x128xi1> to vector<32x128xi32>
    %131 = arith.sitofp %130 : vector<32x128xi32> to vector<32x128xf32>
    %132 = arith.index_cast %23 : i32 to index
    %c0_37 = arith.constant 0 : index
    %133 = vector.load %arg2[%132, %c0_37] : memref<32x128xf32, #tpu.memory_space<vmem>>, vector<32x128xf32>
    tpu.vector_store %arg2[%132, %c0_37], %131 {strides = array<i32>} : memref<32x128xf32, #tpu.memory_space<vmem>>, vector<32x128xf32>,
    %c1_i32_38 = arith.constant 1 : i32
    return
  }
  func.func @transform_0(%arg0: i32) -> (i32, i32) {
    %c0_i32 = arith.constant 0 : i32
    %c0_i32_0 = arith.constant 0 : i32
    return %arg0, %c0_i32 : i32, i32
  }
  func.func @transform_1(%arg0: i32) -> (i32, i32) {
    %c0_i32 = arith.constant 0 : i32
    %c0_i32_0 = arith.constant 0 : i32
    return %arg0, %c0_i32 : i32, i32
  }
}

</mosaic_0001>

<bundles_post_ra>
// kernel: tpu_custom_call.1
= control target key start
LH: loop header
LB: loop body
LE: loop exit
PB: predicated region body
PF: predicated region fallthrough
CT: control target
= control target key end

     0   :  { %6 = vsyncpa [#allocation3], 0  ;;  %s1512_s0 = inlined_call_operand.hbm [shape: f32[128,128], index: 0, kind: input, shape index: {}]   ;;  %s1513_s1 = inlined_call_operand.hbm [shape: f32[128,128], index: 1, kind: output, shape index: {}]  }
   0x1   :  { %8 = vsyncpa [#allocation3 + $0x1], 0 }
   0x2   :  { %9 = vsyncpa [#allocation4], 0 }
   0x3   :  { %11 = vsyncpa [#allocation4 + $0x1], 0  ;;  %s801_s6 = smov 0   ;;  %s803_s7 = smov 0  }
   0x4   :  { %s805_s8 = smov 0   ;;  %s807_s9 = smov 0  }
   0x5 LB: > { %s822_s10 = sadd.s32 4294967295, %s780_s9   ;;  %s610_s11 = sadd.s32 4294967294, %s780_s9   ;;  %s780_s9 = sphi %s807_s9, %s1589_s9   ;;  %s776_s8 = sphi %s805_s8, %s1588_s8   ;;  %s772_s7 = sphi %s803_s7, %s1587_s7   ;;  %s768_s6 = sphi %s801_s6, %s1586_s6  }
   0x6   : > { %s826_s12 = sadd.s32 1, %s780_s9   ;;  %s24_s13 = sadd.s32 1, %s776_s8 }
   0x7   : > { %s21_s14 = ssub.s32 %s780_s9, %s826_s12  ;;  %p31_p0 = scmp.ne.s32.totalorder %s776_s8, %s772_s7 }
   0x8   : > { %p22_p1 = scmp.eq.s32.totalorder %s21_s14, 0  ;;  %p32_p2 = scmp.eq.s32.totalorder %s780_s9, 0 }
   0x9   : > { %p37_p3 = scmp.ne.s32.totalorder %s772_s7, %s768_s6  ;;  %p38_p4 = scmp.eq.s32.totalorder %s822_s10, 0 }
   0xa   : > { %s838_s15 = scalar_select %p22_p1, %s776_s8, %s24_s13  }
   0xb   : > { %p840_p5 = por %p32_p2, %p31_p0  ;;  %p844_p6 = por %p38_p4, %p37_p3 }
   0xc   : > { %p61_p7 = scmp.eq.s32.totalorder %s822_s10, 3  ;;  %p67_p8 = scmp.eq.s32.totalorder %s610_s11, 3 }
   0xd   : > { %p643_p9 = scmp.lt.s32.totalorder %s780_s9, 4  ;;  %s87_s20 = sand.u32 1, %s776_s8  }
   0xe   : > { %p850_p10 = por %p61_p7, %p31_p0  ;;  %p854_p11 = por %p67_p8, %p37_p3 }
   0xf   : > { %s629_s21 = sshll.u32 %s780_s9, 9  ;;  %s613_s22 = sshll.u32 %s87_s20, 5 }
  0x10   : > { %s1517_s18 = scalar_select %p850_p10, 1, 0 }
  0x11   : > { %s1518_s19 = scalar_select %p854_p11, 1, 0 }
  0x12   : > { %s863_s25 = scalar_lea.hbm %s1512_s0, %s629_s21  ;;  %s91_s26 = scalar_lea.vmem [#allocation2], %s613_s22 }
  0x13   : > { %s98_s27 = sshll.u32 %s91_s26, 4  ;;  %p867_p12 = pnand %p643_p9, %p840_p5  ;;  %s871_s27 = int_to_ptr.vmem [resolvable:$true] %s98_s27 }
  0x14   : > { %s873_s29 = scalar_lea.sflag [#allocation3], %s87_s20  ;;  %s684_s30 = scalar_lea.hbm %s863_s25, 512 }
  0x15   : > { %p685_p13 = scmp.ne.s32.totalorder %s863_s25, %s684_s30  ;;  %p686_p0 = pneg %p867_p12 }
  0x16   : > { %s689_s4 = scalar_lea.hbm %s1512_s0, 2048  ;;  %p690_p3 = scmp.lt.u32.totalorder %s863_s25, %s1512_s0 }
  0x17   : > { %p687_p1 = pnand %p686_p0, %p685_p13  ;;  %p691_p4 = scmp.lt.u32.totalorder %s689_s4, %s684_s30 }
  0x18   : > { %p693_p7 = scmp.lt.u32.totalorder %s684_s30, %s863_s25 }
  0x19   : > { %p688_p2 = pneg %p687_p1  ;;  %p692_p5 = por %p691_p4, %p690_p3 }
  0x1b   : > { %p694_p8 = por %p693_p7, %p692_p5 }
  0x1d   : > { %p695_p9 = pnand %p694_p8, %p688_p2 }
  0x1f   : > { %698 = shalt.err (!%p695_p9)
}
  0x20   : > { %s699_s13 = scalar_lea.vmem %s871_s27, 512  ;;  %s782_s14 = smov [#allocation2]  }
  0x21   : > { %p700_p13 = scmp.ne.s32.totalorder %s871_s27, %s699_s13  ;;  %s704_s16 = sshll.u32 %s782_s14, 4  ;;  %s705_s16 = int_to_ptr.vmem [resolvable:$false] %s704_s16 }
  0x22   : > { %s706_s20 = scalar_lea.vmem %s705_s16, 1024  ;;  %p707_p10 = scmp.lt.s32.totalorder %s871_s27, %s705_s16 }
  0x23   : > { %p702_p1 = pnand %p700_p13, %p686_p0  ;;  %p708_p3 = scmp.lt.s32.totalorder %s706_s20, %s699_s13 }
  0x25   : > { %p703_p11 = pneg %p702_p1  ;;  %p709_p4 = por %p708_p3, %p707_p10 }
  0x27   : > { %p710_p5 = pnand %p709_p4, %p703_p11 }
  0x29   : > { %713 = shalt.err (!%p710_p5)
}
  0x2a   : > { %s783_s21 = smov 128   ;;  %s784_s22 = smov 8  }
  0x2b   : > { %638 = dma.hbm_to_vmem [thread:$0]  (!%p867_p12), %s863_s25, 512, %s871_s27, %s873_s29, %s783_s21, %s783_s21, %s784_s22  }
  0x2c   : > { %p616_p0 = scmp.ge.s32.totalorder %s780_s9, 1  ;;  %p106_p2 = scmp.lt.s32.totalorder %s780_s9, 5 }
  0x2e   : > { %p107_p7 = pnand %p616_p0, %p106_p2 }
  0x2f   : > { %s904_s23 = sand.u32 (!%p107_p7), 1, %s772_s7  }
  0x30   : > { %110 = sbr.rel (%p107_p7) target bundleno = 1015 (0x3f7), region = 24  ;;  %s617_s24 = sshll.u32 (!%p107_p7), %s904_s23, 5 }
  0x31   : > { %s113_s26 = scalar_lea.sflag (!%p107_p7), [#allocation3], %s904_s23  ;;  %s116_s30 = scalar_lea.vmem (!%p107_p7), [#allocation2], %s617_s24 }
  0x37   : > { %759 = dma.done.wait (%p844_p6), %s113_s26, 512  }
  0x38   : > { %761 = vsyncadd (%p844_p6), %s113_s26, 4294966784  ;;  %v137_v0 = vlaneseq  ;;  %s785_s25 = smov 1   ;;  %v918_v3 = vld [vmem:[%s116_s30 + $0x8] sm:$0xff]  ;;  %v920_v4 = vld [vmem:[%s116_s30] sm:$0xff]  ;;  %s786_s17 = smov 127  }
  0x39   : > { %v922_v5 = vld [vmem:[%s116_s30 + $0x10] sm:$0xff]  ;;  %v933_v9 = vld [vmem:[%s116_s30 + $0x18] sm:$0xff]  ;;  %s134_s27 = scalar_lea.vmem [#allocation5], %s617_s24  ;;  %s630_s29 = sshll.u32 %s822_s10, 9 }
  0x3a   : > { %v138_v1 = vand.u32 127, %v137_v0  ;;  %s537_s28 = sshll.u32 %s134_s27, 4  ;;  %s1467_s3 = scalar_lea.hbm %s1513_s1, %s630_s29  ;;  %s1458_s28 = int_to_ptr.vmem [resolvable:$true] %s537_s28 }
  0x3b   : > { %s524_s4 = scalar_lea.sflag [#allocation4], %s904_s23  ;;  %s714_s5 = scalar_lea.vmem %s1458_s28, 512 }
  0x3c   : > { %151 = vrot.lane.b32.xlu0 %v138_v1, %s785_s25  ;;  %v915_v2 = vand.u32 7, %v138_v1  ;;  %v619_v22 = vadd.s32 4294967295, %v138_v1  ;;  %p715_p6 = scmp.ne.s32.totalorder %s1458_s28, %s714_s5  ;;  %p1584_p10 = scmp.ne.s32.totalorder %s1517_s18, 0 }
  0x3d   : > { %s788_s11 = smov [#allocation5]  }
  0x3e   : > { %vm159_vm0 = vcmp.eq.s32.totalorder %v915_v2, 0  ;;  %vm204_vm10 = vcmp.eq.s32.totalorder %v915_v2, 1  ;;  %p716_p11 = pnand %p715_p6, %p1584_p10  ;;  %s718_s13 = sshll.u32 %s788_s11, 4  ;;  %s719_s13 = int_to_ptr.vmem [resolvable:$false] %s718_s13 }
  0x3f   : > { %v161_v6 = vsel %vm159_vm0, %v918_v3, 0.0  ;;  %v160_v7 = vsel %vm159_vm0, %v920_v4, 0.0  ;;  %v162_v8 = vsel %vm159_vm0, %v922_v5, 0.0  ;;  %v163_v10 = vsel %vm159_vm0, %v933_v9, 0.0  ;;  %s720_s14 = scalar_lea.vmem %s719_s13, 1024  ;;  %p721_p8 = scmp.lt.s32.totalorder %s1458_s28, %s719_s13 }
  0x40   : > { %vm165_vm1 = vcmp.ge.f32.partialorder %v161_v6, 1.0  ;;  %vm164_vm2 = vcmp.ge.f32.partialorder %v160_v7, 1.0  ;;  %vm166_vm3 = vcmp.ge.f32.partialorder %v162_v8, 1.0  ;;  %vm167_vm5 = vcmp.ge.f32.partialorder %v163_v10, 1.0  ;;  %p717_p12 = pneg %p716_p11  ;;  %p722_p9 = scmp.lt.s32.totalorder %s720_s14, %s714_s5 }
  0x41   : > { %vm940_vm4 = vmand %vm159_vm0, %vm165_vm1 }
  0x42   : > { %v173_v12 = vsel %vm940_vm4, 0.0, %v161_v6  ;;  %vm948_vm6 = vmand %vm159_vm0, %vm164_vm2  ;;  %p723_p13 = por %p722_p9, %p721_p8 }
  0x43   : > { %178 = vrot.lane.b32.xlu1 %v173_v12, %s785_s25  ;;  %v172_v14 = vsel %vm948_vm6, 0.0, %v160_v7  ;;  %vm957_vm7 = vmand %vm159_vm0, %vm166_vm3 }
  0x44   : > { %176 = vrot.lane.b32.xlu0 %v172_v14, %s785_s25  ;;  %v174_v16 = vsel %vm957_vm7, 0.0, %v162_v8  ;;  %vm966_vm8 = vmand %vm159_vm0, %vm167_vm5  ;;  %p724_p1 = pnand %p723_p13, %p717_p12 }
  0x45   : > { %v175_v18 = vsel %vm966_vm8, 0.0, %v163_v10 }
  0x47   : > { %180 = vrot.lane.b32.xlu1 %v174_v16, %s785_s25 }
  0x48   : > { %182 = vrot.lane.b32.xlu0 %v175_v18, %s785_s25 }
  0x4b   : > { %184 = vrot.lane.b32.xlu1 %v172_v14, %s786_s17 }
  0x4c   : > { %186 = vrot.lane.b32.xlu0 %v173_v12, %s786_s17 }
  0x4f   : > { %188 = vrot.lane.b32.xlu1 %v174_v16, %s786_s17 }
  0x50   : > { %190 = vrot.lane.b32.xlu0 %v175_v18, %s786_s17 }
  0xae   : > { %v152_v19 = vpop.permute.xlu0 %151 }
  0xaf   : > { %vm978_vm9 = vcmp.eq.s32.totalorder %v152_v19, %v619_v22 }
  0xb5   : > { %v179_v20 = vpop.permute.xlu1 %178 }
  0xb6   : > { %v177_v21 = vpop.permute.xlu0 %176 }
  0xb9   : > { %v181_v23 = vpop.permute.xlu1 %180 }
  0xba   : > { %v183_v24 = vpop.permute.xlu0 %182 }
  0xbd   : > { %v185_v26 = vpop.permute.xlu1 %184 }
  0xbe   : > { %v192_v27 = vsel %vm978_vm9, %v177_v21, %v185_v26  ;;  %v187_v28 = vpop.permute.xlu0 %186 }
  0xbf   : > { %v196_v29 = vmul.f32 0.125, %v192_v27  ;;  %v193_v30 = vsel %vm978_vm9, %v179_v20, %v187_v28 }
  0xc0   : > { %v197_v31 = vmul.f32 0.125, %v193_v30 }
  0xc1   : > { %v200_v32 = vadd.f32 %v196_v29, %v920_v4  ;;  %v189_v33 = vpop.permute.xlu1 %188 }
  0xc2   : > { %v201_v34 = vadd.f32 %v197_v31, %v918_v3  ;;  %v194_v35 = vsel %vm978_vm9, %v181_v23, %v189_v33  ;;  %v191_v36 = vpop.permute.xlu0 %190 }
  0xc3   : > { %v198_v37 = vmul.f32 0.125, %v194_v35  ;;  %v195_v38 = vsel %vm978_vm9, %v183_v24, %v191_v36  ;;  %vm205_vm11 = vcmp.ge.f32.partialorder %v200_v32, 1.0 }
  0xc4   : > { %v199_v39 = vmul.f32 0.125, %v195_v38  ;;  %vm995_vm12 = vmand %vm204_vm10, %vm205_vm11  ;;  %vm206_vm13 = vcmp.ge.f32.partialorder %v201_v34, 1.0 }
  0xc5   : > { %v202_v41 = vadd.f32 %v198_v37, %v922_v5  ;;  %v213_v42 = vsel %vm995_vm12, 0.0, %v200_v32  ;;  %vm1007_vm14 = vmand %vm204_vm10, %vm206_vm13 }
  0xc6   : > { %v203_v43 = vadd.f32 %v199_v39, %v933_v9  ;;  %v217_v44 = vsel %vm204_vm10, %v213_v42, %v172_v14  ;;  %v214_v46 = vsel %vm1007_vm14, 0.0, %v201_v34  ;;  %vm221_vm3 = vmor %vm948_vm6, %vm995_vm12 }
  0xc7   : > { %225 = vrot.lane.b32.xlu1 %v217_v44, %s785_s25  ;;  %vm207_vm15 = vcmp.ge.f32.partialorder %v202_v41, 1.0  ;;  %v218_v47 = vsel %vm204_vm10, %v214_v46, %v173_v12  ;;  %vm222_vm5 = vmor %vm940_vm4, %vm1007_vm14 }
  0xc8   : > { %vm1018_vm0 = vmand %vm204_vm10, %vm207_vm15  ;;  %vm208_vm1 = vcmp.ge.f32.partialorder %v203_v43, 1.0  ;;  %227 = vrot.lane.b32.xlu0 %v218_v47, %s785_s25 }
  0xc9   : > { %v215_v49 = vsel %vm1018_vm0, 0.0, %v202_v41  ;;  %vm1029_vm2 = vmand %vm204_vm10, %vm208_vm1 }
  0xca   : > { %v219_v50 = vsel %vm204_vm10, %v215_v49, %v174_v16  ;;  %v216_v52 = vsel %vm1029_vm2, 0.0, %v203_v43 }
  0xcb   : > { %229 = vrot.lane.b32.xlu1 %v219_v50, %s785_s25  ;;  %v220_v53 = vsel %vm204_vm10, %v216_v52, %v175_v18  ;;  %vm253_vm10 = vcmp.eq.s32.totalorder %v915_v2, 2 }
  0xcc   : > { %231 = vrot.lane.b32.xlu0 %v220_v53, %s785_s25 }
  0xcf   : > { %233 = vrot.lane.b32.xlu1 %v217_v44, %s786_s17 }
  0xd0   : > { %235 = vrot.lane.b32.xlu0 %v218_v47, %s786_s17 }
  0xd3   : > { %237 = vrot.lane.b32.xlu1 %v219_v50, %s786_s17 }
  0xd4   : > { %239 = vrot.lane.b32.xlu0 %v220_v53, %s786_s17 }
 0x139   : > { %v226_v54 = vpop.permute.xlu1 %225 }
 0x13a   : > { %v228_v55 = vpop.permute.xlu0 %227 }
 0x13d   : > { %v230_v56 = vpop.permute.xlu1 %229 }
 0x13e   : > { %v232_v57 = vpop.permute.xlu0 %231 }
 0x141   : > { %v234_v58 = vpop.permute.xlu1 %233 }
 0x142   : > { %v241_v59 = vsel %vm978_vm9, %v226_v54, %v234_v58  ;;  %v236_v61 = vpop.permute.xlu0 %235 }
 0x143   : > { %v245_v60 = vmul.f32 0.125, %v241_v59  ;;  %v242_v62 = vsel %vm978_vm9, %v228_v55, %v236_v61 }
 0x144   : > { %v246_v0 = vmul.f32 0.125, %v242_v62 }
 0x145   : > { %v249_v63 = vadd.f32 %v245_v60, %v920_v4  ;;  %v238_v1 = vpop.permute.xlu1 %237 }
 0x146   : > { %v243_v6 = vsel %vm978_vm9, %v230_v56, %v238_v1  ;;  %v250_v7 = vadd.f32 %v246_v0, %v918_v3  ;;  %v240_v10 = vpop.permute.xlu0 %239 }
 0x147   : > { %v247_v8 = vmul.f32 0.125, %v243_v6  ;;  %vm254_vm15 = vcmp.ge.f32.partialorder %v249_v63, 1.0  ;;  %v244_v12 = vsel %vm978_vm9, %v232_v57, %v240_v10 }
 0x148   : > { %vm258_vm1 = vmand %vm253_vm10, %vm254_vm15  ;;  %v248_v16 = vmul.f32 0.125, %v244_v12  ;;  %vm255_vm11 = vcmp.ge.f32.partialorder %v250_v7, 1.0 }
 0x149   : > { %v251_v14 = vadd.f32 %v247_v8, %v922_v5  ;;  %v262_v18 = vsel %vm258_vm1, 0.0, %v249_v63  ;;  %vm1078_vm13 = vmor %vm221_vm3, %vm258_vm1 }
 0x14a   : > { %v266_v20 = vsel %vm253_vm10, %v262_v18, %v217_v44  ;;  %vm259_vm15 = vmand %vm253_vm10, %vm255_vm11  ;;  %v252_v21 = vadd.f32 %v248_v16, %v933_v9 }
 0x14b   : > { %274 = vrot.lane.b32.xlu1 %v266_v20, %s785_s25  ;;  %v263_v22 = vsel %vm259_vm15, 0.0, %v250_v7  ;;  %vm1093_vm6 = vmor %vm222_vm5, %vm259_vm15  ;;  %vm256_vm12 = vcmp.ge.f32.partialorder %v251_v14, 1.0 }
 0x14c   : > { %v267_v23 = vsel %vm253_vm10, %v263_v22, %v218_v47  ;;  %vm260_vm3 = vmand %vm253_vm10, %vm256_vm12  ;;  %vm257_vm14 = vcmp.ge.f32.partialorder %v252_v21, 1.0 }
 0x14d   : > { %276 = vrot.lane.b32.xlu0 %v267_v23, %s785_s25  ;;  %v264_v24 = vsel %vm260_vm3, 0.0, %v251_v14  ;;  %vm1542_vm11 = vmor %vm957_vm7, %vm1018_vm0 }
 0x14e   : > { %vm1107_vm4 = vmor %vm1542_vm11, %vm260_vm3  ;;  %v268_v26 = vsel %vm253_vm10, %v264_v24, %v219_v50 }
 0x14f   : > { %vm261_vm5 = vmand %vm253_vm10, %vm257_vm14  ;;  %278 = vrot.lane.b32.xlu1 %v268_v26, %s785_s25 }
 0x150   : > { %v265_v27 = vsel %vm261_vm5, 0.0, %v252_v21  ;;  %vm1545_vm1 = vmor %vm966_vm8, %vm1029_vm2  ;;  %vm302_vm8 = vcmp.eq.s32.totalorder %v915_v2, 3 }
 0x151   : > { %vm1121_vm7 = vmor %vm1545_vm1, %vm261_vm5  ;;  %v269_v28 = vsel %vm253_vm10, %v265_v27, %v220_v53 }
 0x152   : > { %280 = vrot.lane.b32.xlu0 %v269_v28, %s785_s25 }
 0x153   : > { %282 = vrot.lane.b32.xlu1 %v266_v20, %s786_s17 }
 0x156   : > { %284 = vrot.lane.b32.xlu0 %v267_v23, %s786_s17 }
 0x157   : > { %286 = vrot.lane.b32.xlu1 %v268_v26, %s786_s17 }
 0x15a   : > { %288 = vrot.lane.b32.xlu0 %v269_v28, %s786_s17 }
 0x1bd   : > { %v275_v17 = vpop.permute.xlu1 %274 }
 0x1bf   : > { %v277_v29 = vpop.permute.xlu0 %276 }
 0x1c1   : > { %v279_v30 = vpop.permute.xlu1 %278 }
 0x1c4   : > { %v281_v31 = vpop.permute.xlu0 %280 }
 0x1c5   : > { %v283_v32 = vpop.permute.xlu1 %282 }
 0x1c6   : > { %v290_v33 = vsel %vm978_vm9, %v275_v17, %v283_v32 }
 0x1c7   : > { %v294_v34 = vmul.f32 0.125, %v290_v33 }
 0x1c8   : > { %v285_v35 = vpop.permute.xlu0 %284 }
 0x1c9   : > { %v291_v36 = vsel %vm978_vm9, %v277_v29, %v285_v35  ;;  %v298_v37 = vadd.f32 %v294_v34, %v920_v4  ;;  %v287_v39 = vpop.permute.xlu1 %286 }
 0x1ca   : > { %v295_v38 = vmul.f32 0.125, %v291_v36  ;;  %v292_v40 = vsel %vm978_vm9, %v279_v30, %v287_v39 }
 0x1cb   : > { %v296_v42 = vmul.f32 0.125, %v292_v40  ;;  %vm303_vm0 = vcmp.ge.f32.partialorder %v298_v37, 1.0 }
 0x1cc   : > { %v299_v41 = vadd.f32 %v295_v38, %v918_v3  ;;  %v289_v43 = vpop.permute.xlu0 %288  ;;  %vm1145_vm2 = vmand %vm302_vm8, %vm303_vm0 }
 0x1cd   : > { %v293_v44 = vsel %vm978_vm9, %v281_v31, %v289_v43  ;;  %v300_v46 = vadd.f32 %v296_v42, %v922_v5  ;;  %v311_v48 = vsel %vm1145_vm2, 0.0, %v298_v37  ;;  %vm319_vm10 = vmor %vm1078_vm13, %vm1145_vm2 }
 0x1ce   : > { %v297_v47 = vmul.f32 0.125, %v293_v44  ;;  %vm304_vm15 = vcmp.ge.f32.partialorder %v299_v41, 1.0  ;;  %v315_v49 = vsel %vm302_vm8, %v311_v48, %v266_v20 }
 0x1cf   : > { %vm1160_vm12 = vmand %vm302_vm8, %vm304_vm15  ;;  %323 = vrot.lane.b32.xlu1 %v315_v49, %s785_s25  ;;  %vm305_vm11 = vcmp.ge.f32.partialorder %v300_v46, 1.0 }
 0x1d0   : > { %v301_v51 = vadd.f32 %v297_v47, %v933_v9  ;;  %v312_v52 = vsel %vm1160_vm12, 0.0, %v299_v41  ;;  %vm320_vm3 = vmor %vm1093_vm6, %vm1160_vm12 }
 0x1d1   : > { %v316_v53 = vsel %vm302_vm8, %v312_v52, %v267_v23  ;;  %vm1176_vm14 = vmand %vm302_vm8, %vm305_vm11 }
 0x1d2   : > { %325 = vrot.lane.b32.xlu0 %v316_v53, %s785_s25  ;;  %v313_v55 = vsel %vm1176_vm14, 0.0, %v300_v46  ;;  %vm306_vm1 = vcmp.ge.f32.partialorder %v301_v51, 1.0 }
 0x1d3   : > { %v317_v56 = vsel %vm302_vm8, %v313_v55, %v268_v26  ;;  %vm1191_vm0 = vmand %vm302_vm8, %vm306_vm1 }
 0x1d4   : > { %327 = vrot.lane.b32.xlu1 %v317_v56, %s785_s25  ;;  %v314_v58 = vsel %vm1191_vm0, 0.0, %v301_v51 }
 0x1d5   : > { %v318_v59 = vsel %vm302_vm8, %v314_v58, %v269_v28  ;;  %vm351_vm8 = vcmp.eq.s32.totalorder %v915_v2, 4 }
 0x1d6   : > { %329 = vrot.lane.b32.xlu0 %v318_v59, %s785_s25 }
 0x1d8   : > { %331 = vrot.lane.b32.xlu1 %v315_v49, %s786_s17 }
 0x1da   : > { %333 = vrot.lane.b32.xlu0 %v316_v53, %s786_s17 }
 0x1dc   : > { %335 = vrot.lane.b32.xlu1 %v317_v56, %s786_s17 }
 0x1de   : > { %337 = vrot.lane.b32.xlu0 %v318_v59, %s786_s17 }
 0x241   : > { %v324_v60 = vpop.permute.xlu1 %323 }
 0x244   : > { %v326_v61 = vpop.permute.xlu0 %325 }
 0x246   : > { %v328_v62 = vpop.permute.xlu1 %327 }
 0x248   : > { %v330_v63 = vpop.permute.xlu0 %329 }
 0x24a   : > { %v332_v0 = vpop.permute.xlu1 %331 }
 0x24b   : > { %v339_v1 = vsel %vm978_vm9, %v324_v60, %v332_v0 }
 0x24c   : > { %v343_v6 = vmul.f32 0.125, %v339_v1  ;;  %v334_v7 = vpop.permute.xlu0 %333 }
 0x24d   : > { %v340_v8 = vsel %vm978_vm9, %v326_v61, %v334_v7 }
 0x24e   : > { %v347_v10 = vadd.f32 %v343_v6, %v920_v4  ;;  %v344_v12 = vmul.f32 0.125, %v340_v8  ;;  %v336_v14 = vpop.permute.xlu1 %335 }
 0x24f   : > { %v341_v16 = vsel %vm978_vm9, %v328_v62, %v336_v14 }
 0x250   : > { %v348_v18 = vadd.f32 %v344_v12, %v918_v3  ;;  %v345_v20 = vmul.f32 0.125, %v341_v16  ;;  %v338_v21 = vpop.permute.xlu0 %337  ;;  %vm352_vm11 = vcmp.ge.f32.partialorder %v347_v10, 1.0 }
 0x251   : > { %v342_v22 = vsel %vm978_vm9, %v330_v63, %v338_v21  ;;  %vm356_vm1 = vmand %vm351_vm8, %vm352_vm11 }
 0x252   : > { %v349_v23 = vadd.f32 %v345_v20, %v922_v5  ;;  %v346_v24 = vmul.f32 0.125, %v342_v22  ;;  %v360_v26 = vsel %vm356_vm1, 0.0, %v347_v10  ;;  %vm1228_vm15 = vmor %vm319_vm10, %vm356_vm1  ;;  %vm353_vm5 = vcmp.ge.f32.partialorder %v348_v18, 1.0 }
 0x253   : > { %v364_v28 = vsel %vm351_vm8, %v360_v26, %v315_v49  ;;  %vm357_vm11 = vmand %vm351_vm8, %vm353_vm5 }
 0x254   : > { %v350_v17 = vadd.f32 %v346_v24, %v933_v9  ;;  %372 = vrot.lane.b32.xlu1 %v364_v28, %s785_s25  ;;  %v361_v29 = vsel %vm357_vm11, 0.0, %v348_v18  ;;  %vm1243_vm13 = vmor %vm320_vm3, %vm357_vm11  ;;  %vm354_vm2 = vcmp.ge.f32.partialorder %v349_v23, 1.0 }
 0x255   : > { %v365_v30 = vsel %vm351_vm8, %v361_v29, %v316_v53  ;;  %vm358_vm10 = vmand %vm351_vm8, %vm354_vm2 }
 0x256   : > { %374 = vrot.lane.b32.xlu0 %v365_v30, %s785_s25  ;;  %v362_v31 = vsel %vm358_vm10, 0.0, %v349_v23  ;;  %vm1560_vm5 = vmor %vm1107_vm4, %vm1176_vm14  ;;  %vm355_vm12 = vcmp.ge.f32.partialorder %v350_v17, 1.0 }
 0x257   : > { %vm1257_vm6 = vmor %vm1560_vm5, %vm358_vm10  ;;  %v366_v32 = vsel %vm351_vm8, %v362_v31, %v317_v56 }
 0x258   : > { %vm359_vm3 = vmand %vm351_vm8, %vm355_vm12  ;;  %376 = vrot.lane.b32.xlu1 %v366_v32, %s785_s25 }
 0x259   : > { %v363_v33 = vsel %vm359_vm3, 0.0, %v350_v17  ;;  %vm1563_vm1 = vmor %vm1121_vm7, %vm1191_vm0  ;;  %vm400_vm7 = vcmp.eq.s32.totalorder %v915_v2, 5 }
 0x25a   : > { %vm1271_vm4 = vmor %vm1563_vm1, %vm359_vm3  ;;  %v367_v34 = vsel %vm351_vm8, %v363_v33, %v318_v59 }
 0x25b   : > { %378 = vrot.lane.b32.xlu0 %v367_v34, %s785_s25 }
 0x25c   : > { %380 = vrot.lane.b32.xlu1 %v364_v28, %s786_s17 }
 0x25f   : > { %382 = vrot.lane.b32.xlu0 %v365_v30, %s786_s17 }
 0x260   : > { %384 = vrot.lane.b32.xlu1 %v366_v32, %s786_s17 }
 0x263   : > { %386 = vrot.lane.b32.xlu0 %v367_v34, %s786_s17 }
 0x2c6   : > { %v373_v15 = vpop.permute.xlu1 %372 }
 0x2c8   : > { %v375_v35 = vpop.permute.xlu0 %374 }
 0x2ca   : > { %v377_v36 = vpop.permute.xlu1 %376 }
 0x2cd   : > { %v379_v37 = vpop.permute.xlu0 %378 }
 0x2ce   : > { %v381_v38 = vpop.permute.xlu1 %380 }
 0x2cf   : > { %v388_v39 = vsel %vm978_vm9, %v373_v15, %v381_v38 }
 0x2d0   : > { %v392_v40 = vmul.f32 0.125, %v388_v39 }
 0x2d1   : > { %v383_v41 = vpop.permute.xlu0 %382 }
 0x2d2   : > { %v389_v42 = vsel %vm978_vm9, %v375_v35, %v383_v41  ;;  %v396_v43 = vadd.f32 %v392_v40, %v920_v4  ;;  %v385_v45 = vpop.permute.xlu1 %384 }
 0x2d3   : > { %v393_v44 = vmul.f32 0.125, %v389_v42  ;;  %v390_v46 = vsel %vm978_vm9, %v377_v36, %v385_v45 }
 0x2d4   : > { %v394_v48 = vmul.f32 0.125, %v390_v46  ;;  %vm401_vm14 = vcmp.ge.f32.partialorder %v396_v43, 1.0 }
 0x2d5   : > { %v397_v47 = vadd.f32 %v393_v44, %v918_v3  ;;  %v387_v49 = vpop.permute.xlu0 %386  ;;  %vm1295_vm0 = vmand %vm400_vm7, %vm401_vm14 }
 0x2d6   : > { %v391_v50 = vsel %vm978_vm9, %v379_v37, %v387_v49  ;;  %v398_v52 = vadd.f32 %v394_v48, %v922_v5  ;;  %v409_v54 = vsel %vm1295_vm0, 0.0, %v396_v43  ;;  %vm417_vm8 = vmor %vm1228_vm15, %vm1295_vm0 }
 0x2d7   : > { %v395_v53 = vmul.f32 0.125, %v391_v50  ;;  %vm402_vm11 = vcmp.ge.f32.partialorder %v397_v47, 1.0  ;;  %v413_v55 = vsel %vm400_vm7, %v409_v54, %v364_v28 }
 0x2d8   : > { %vm1310_vm2 = vmand %vm400_vm7, %vm402_vm11  ;;  %421 = vrot.lane.b32.xlu1 %v413_v55, %s785_s25  ;;  %vm403_vm5 = vcmp.ge.f32.partialorder %v398_v52, 1.0 }
 0x2d9   : > { %v399_v57 = vadd.f32 %v395_v53, %v933_v9  ;;  %v410_v58 = vsel %vm1310_vm2, 0.0, %v397_v47  ;;  %vm418_vm10 = vmor %vm1243_vm13, %vm1310_vm2 }
 0x2da   : > { %v414_v59 = vsel %vm400_vm7, %v410_v58, %v365_v30  ;;  %vm1326_vm12 = vmand %vm400_vm7, %vm403_vm5 }
 0x2db   : > { %423 = vrot.lane.b32.xlu0 %v414_v59, %s785_s25  ;;  %v411_v61 = vsel %vm1326_vm12, 0.0, %v398_v52  ;;  %vm404_vm1 = vcmp.ge.f32.partialorder %v399_v57, 1.0 }
 0x2dc   : > { %v415_v62 = vsel %vm400_vm7, %v411_v61, %v366_v32  ;;  %vm1341_vm14 = vmand %vm400_vm7, %vm404_vm1 }
 0x2dd   : > { %425 = vrot.lane.b32.xlu1 %v415_v62, %s785_s25  ;;  %v412_v0 = vsel %vm1341_vm14, 0.0, %v399_v57 }
 0x2de   : > { %v416_v1 = vsel %vm400_vm7, %v412_v0, %v367_v34  ;;  %vm449_vm7 = vcmp.eq.s32.totalorder %v915_v2, 6 }
 0x2df   : > { %427 = vrot.lane.b32.xlu0 %v416_v1, %s785_s25 }
 0x2e1   : > { %429 = vrot.lane.b32.xlu1 %v413_v55, %s786_s17 }
 0x2e3   : > { %431 = vrot.lane.b32.xlu0 %v414_v59, %s786_s17 }
 0x2e5   : > { %433 = vrot.lane.b32.xlu1 %v415_v62, %s786_s17 }
 0x2e7   : > { %435 = vrot.lane.b32.xlu0 %v416_v1, %s786_s17 }
 0x34a   : > { %v422_v6 = vpop.permute.xlu1 %421 }
 0x34d   : > { %v424_v7 = vpop.permute.xlu0 %423 }
 0x34f   : > { %v426_v8 = vpop.permute.xlu1 %425 }
 0x351   : > { %v428_v10 = vpop.permute.xlu0 %427 }
 0x353   : > { %v430_v12 = vpop.permute.xlu1 %429 }
 0x354   : > { %v437_v14 = vsel %vm978_vm9, %v422_v6, %v430_v12 }
 0x355   : > { %v441_v16 = vmul.f32 0.125, %v437_v14  ;;  %v432_v18 = vpop.permute.xlu0 %431 }
 0x356   : > { %v438_v20 = vsel %vm978_vm9, %v424_v7, %v432_v18 }
 0x357   : > { %v445_v21 = vadd.f32 %v441_v16, %v920_v4  ;;  %v442_v22 = vmul.f32 0.125, %v438_v20  ;;  %v434_v23 = vpop.permute.xlu1 %433 }
 0x358   : > { %v439_v24 = vsel %vm978_vm9, %v426_v8, %v434_v23 }
 0x359   : > { %v446_v26 = vadd.f32 %v442_v22, %v918_v3  ;;  %v443_v28 = vmul.f32 0.125, %v439_v24  ;;  %v436_v17 = vpop.permute.xlu0 %435  ;;  %vm450_vm5 = vcmp.ge.f32.partialorder %v445_v21, 1.0 }
 0x35a   : > { %v440_v29 = vsel %vm978_vm9, %v428_v10, %v436_v17  ;;  %vm454_vm1 = vmand %vm449_vm7, %vm450_vm5 }
 0x35b   : > { %v447_v30 = vadd.f32 %v443_v28, %v922_v5  ;;  %v444_v31 = vmul.f32 0.125, %v440_v29  ;;  %v458_v32 = vsel %vm454_vm1, 0.0, %v445_v21  ;;  %vm1378_vm11 = vmor %vm417_vm8, %vm454_vm1  ;;  %vm451_vm3 = vcmp.ge.f32.partialorder %v446_v26, 1.0 }
 0x35c   : > { %v462_v34 = vsel %vm449_vm7, %v458_v32, %v413_v55  ;;  %vm455_vm5 = vmand %vm449_vm7, %vm451_vm3 }
 0x35d   : > { %v448_v15 = vadd.f32 %v444_v31, %v933_v9  ;;  %470 = vrot.lane.b32.xlu1 %v462_v34, %s785_s25  ;;  %v459_v35 = vsel %vm455_vm5, 0.0, %v446_v26  ;;  %vm1393_vm15 = vmor %vm418_vm10, %vm455_vm5  ;;  %vm452_vm0 = vcmp.ge.f32.partialorder %v447_v30, 1.0 }
 0x35e   : > { %v463_v36 = vsel %vm449_vm7, %v459_v35, %v414_v59  ;;  %vm456_vm8 = vmand %vm449_vm7, %vm452_vm0 }
 0x35f   : > { %472 = vrot.lane.b32.xlu0 %v463_v36, %s785_s25  ;;  %v460_v37 = vsel %vm456_vm8, 0.0, %v447_v30  ;;  %vm1578_vm3 = vmor %vm1257_vm6, %vm1326_vm12  ;;  %vm453_vm2 = vcmp.ge.f32.partialorder %v448_v15, 1.0 }
 0x360   : > { %vm1407_vm13 = vmor %vm1578_vm3, %vm456_vm8  ;;  %v464_v38 = vsel %vm449_vm7, %v460_v37, %v415_v62 }
 0x361   : > { %vm457_vm10 = vmand %vm449_vm7, %vm453_vm2  ;;  %474 = vrot.lane.b32.xlu1 %v464_v38, %s785_s25 }
 0x362   : > { %v461_v39 = vsel %vm457_vm10, 0.0, %v448_v15  ;;  %vm1581_vm1 = vmor %vm1271_vm4, %vm1341_vm14  ;;  %vm498_vm4 = vcmp.eq.s32.totalorder %v915_v2, 7 }
 0x363   : > { %vm1421_vm6 = vmor %vm1581_vm1, %vm457_vm10  ;;  %v465_v40 = vsel %vm449_vm7, %v461_v39, %v416_v1 }
 0x364   : > { %476 = vrot.lane.b32.xlu0 %v465_v40, %s785_s25 }
 0x365   : > { %478 = vrot.lane.b32.xlu1 %v462_v34, %s786_s17 }
 0x368   : > { %480 = vrot.lane.b32.xlu0 %v463_v36, %s786_s17 }
 0x369   : > { %482 = vrot.lane.b32.xlu1 %v464_v38, %s786_s17 }
 0x36c   : > { %484 = vrot.lane.b32.xlu0 %v465_v40, %s786_s17 }
 0x3cf   : > { %v471_v11 = vpop.permute.xlu1 %470 }
 0x3d1   : > { %v473_v41 = vpop.permute.xlu0 %472 }
 0x3d3   : > { %v475_v42 = vpop.permute.xlu1 %474 }
 0x3d6   : > { %v477_v43 = vpop.permute.xlu0 %476 }
 0x3d7   : > { %v479_v44 = vpop.permute.xlu1 %478 }
 0x3d8   : > { %v486_v45 = vsel %vm978_vm9, %v471_v11, %v479_v44 }
 0x3d9   : > { %v490_v46 = vmul.f32 0.125, %v486_v45 }
 0x3da   : > { %v481_v47 = vpop.permute.xlu0 %480 }
 0x3db   : > { %v487_v48 = vsel %vm978_vm9, %v473_v41, %v481_v47  ;;  %v494_v49 = vadd.f32 %v490_v46, %v920_v4  ;;  %v483_v51 = vpop.permute.xlu1 %482 }
 0x3dc   : > { %v491_v50 = vmul.f32 0.125, %v487_v48  ;;  %v488_v52 = vsel %vm978_vm9, %v475_v42, %v483_v51 }
 0x3dd   : > { %vm499_vm12 = vcmp.ge.f32.partialorder %v494_v49, 1.0  ;;  %v492_v54 = vmul.f32 0.125, %v488_v52 }
 0x3de   : > { %v495_v53 = vadd.f32 %v491_v50, %v918_v3  ;;  %v485_v55 = vpop.permute.xlu0 %484  ;;  %vm503_vm14 = vmand %vm498_vm4, %vm499_vm12  ;;  %v787_v3 = vmov 0.0  }
 0x3df   : > { %v489_v56 = vsel %vm978_vm9, %v477_v43, %v485_v55  ;;  %vm507_vm7 = vmor %vm1378_vm11, %vm503_vm14  ;;  %v496_v4 = vadd.f32 %v492_v54, %v922_v5 }
 0x3e0   : > { %vm500_vm5 = vcmp.ge.f32.partialorder %v495_v53, 1.0  ;;  %v493_v57 = vmul.f32 0.125, %v489_v56  ;;  %v620_v58 = vsel %vm507_vm7, 1.0, %v787_v3 }
 0x3e1   : > { %vm504_vm0 = vmand %vm498_vm4, %vm500_vm5  ;;  %519 = vst [vmem:[%s134_s27] sm:$0xff] %v620_v58  ;;  %vm501_vm9 = vcmp.ge.f32.partialorder %v496_v4, 1.0 }
 0x3e2   : > { %vm508_vm8 = vmor %vm1393_vm15, %vm504_vm0  ;;  %v497_v25 = vadd.f32 %v493_v57, %v933_v9 }
 0x3e3   : > { %v621_v59 = vsel %vm508_vm8, 1.0, %v787_v3  ;;  %vm505_vm11 = vmand %vm498_vm4, %vm501_vm9 }
 0x3e4   : > { %520 = vst [vmem:[%s134_s27 + $0x8] sm:$0xff] %v621_v59  ;;  %vm509_vm3 = vmor %vm1407_vm13, %vm505_vm11  ;;  %vm502_vm2 = vcmp.ge.f32.partialorder %v497_v25, 1.0 }
 0x3e5   : > { %v622_v5 = vsel %vm509_vm3, 1.0, %v787_v3  ;;  %vm506_vm15 = vmand %vm498_vm4, %vm502_vm2 }
 0x3e6   : > { %521 = vst [vmem:[%s134_s27 + $0x10] sm:$0xff] %v622_v5  ;;  %vm510_vm10 = vmor %vm1421_vm6, %vm506_vm15 }
 0x3e7   : > { %v623_v9 = vsel %vm510_vm10, 1.0, %v787_v3 }
 0x3e8   : > { %522 = vst [vmem:[%s134_s27 + $0x18] sm:$0xff] %v623_v9 }
 0x3e9   : > { %727 = shalt.err (!%p724_p1)
}
 0x3ea   : > { %s728_s16 = scalar_lea.hbm %s1467_s3, 512  ;;  %s732_s22 = scalar_lea.hbm %s1513_s1, 2048 }
 0x3eb   : > { %p729_p3 = scmp.ne.s32.totalorder %s1467_s3, %s728_s16  ;;  %p733_p0 = scmp.lt.u32.totalorder %s1467_s3, %s1513_s1 }
 0x3ec   : > { %p734_p2 = scmp.lt.u32.totalorder %s732_s22, %s728_s16  ;;  %p736_p6 = scmp.lt.u32.totalorder %s728_s16, %s1467_s3 }
 0x3ed   : > { %p730_p4 = pnand %p729_p3, %p1584_p10 }
 0x3ee   : > { %p735_p7 = por %p734_p2, %p733_p0 }
 0x3ef   : > { %p731_p5 = pneg %p730_p4 }
 0x3f0   : > { %p737_p11 = por %p736_p6, %p735_p7 }
 0x3f2   : > { %p738_p12 = pnand %p737_p11, %p731_p5 }
 0x3f4   : > { %741 = shalt.err (!%p738_p12)
}
 0x3f5   : > { %s789_s30 = smov 128   ;;  %s790_s25 = smov 8  }
 0x3f6   : > { %633 = dma.vmem_to_hbm [thread:$0]  (%p1584_p10), %s1458_s28, 512, %s1467_s3, %s524_s4, %s789_s30, %s789_s30, %s790_s25  }
 0x3f7 PF: > { %p644_p8 = scmp.ge.s32.totalorder %s780_s9, 2  ;;  %s552_s17 = sand.u32 1, %s768_s6  }
 0x3f8   : > { %p1585_p9 = scmp.ne.s32.totalorder %s1518_s19, 0  ;;  %s553_s27 = scalar_lea.sflag [#allocation4], %s552_s17 }
 0x3fa   : > { %p640_p13 = pnand %p644_p8, %p1585_p9 }
 0x3fc   : > { %763 = dma.done.wait (!%p640_p13), %s553_s27, 512  }
 0x3fd   : > { %765 = vsyncadd (!%p640_p13), %s553_s27, 4294966784  ;;  %p14_p1 = scmp.ge.s32.totalorder %s826_s12, 6   ;;  %s1586_s6 = smov %s772_s7 }
 0x3fe   : > { %s1587_s7 = smov %s776_s8  ;;  %s1588_s8 = smov %s838_s15 }
 0x3ff   : > { %s1589_s9 = smov %s826_s12  ;;  %16 = sbr.rel (!%p14_p1) target bundleno = 5 (0x5), region = 69 }
 0x406   :  { %558 = vsyncpa [#allocation3], 1 }
 0x407   :  { %560 = vsyncpa [#allocation3 + $0x1], 1 }
 0x408   :  { %561 = vsyncpa [#allocation4], 1 }
 0x409   :  { %563 = vsyncpa [#allocation4 + $0x1], 1 }

</bundles_post_ra>
